<compile_context>
chip_gen: v5e
topology: v5e:2x2
jax: 0.10.0
libtpu: 0.0.40
codegen_flags: <defaults>
</compile_context>

<pallas_src>
import jax
import jax.numpy as jnp
from jax import lax
from jax.experimental import pallas as pl
from jax.experimental.pallas import tpu as pltpu


_NEG = -1e30  # finite "-inf": masked rows/cols can never produce inf-inf NaNs


def _round_up(x, m):
    return ((x + m - 1) // m) * m


def _make_infonce_kernel(*, temperature, b_true, b_pad, d_pad, row_blk, n_blocks):
    inv_temp = 1.0 / float(temperature)
    half_temp = 0.5 * float(temperature)

    def _sum_all(x):  # full reduce, kept in the vector domain as (1, 1)
        return jnp.sum(jnp.sum(x, axis=-1, keepdims=True), axis=0, keepdims=True)

    def kernel(c_blk_ref, c_all_ref, o_ref,
               s1_ref, s2_ref, cmax_ref, csum_ref, ctsum_ref):
        blk = pl.program_id(0)

        # ---- init accumulators on the first row block ----
        @pl.when(blk == 0)
        def _init():
            s1_ref[...] = jnp.zeros((1, 1), jnp.float32)
            s2_ref[...] = jnp.zeros((1, 1), jnp.float32)
            cmax_ref[...] = jnp.full((1, b_pad), _NEG, jnp.float32)
            csum_ref[...] = jnp.zeros((1, b_pad), jnp.float32)
            ctsum_ref[...] = jnp.zeros((1, b_pad), jnp.float32)

        # C = [A | T] along features (lane axis); slices are 128-lane aligned.
        a_all = c_all_ref[:, pl.ds(0, d_pad)]        # (b_pad, d_pad)
        t_blk = c_blk_ref[:, pl.ds(d_pad, d_pad)]    # (row_blk, d_pad)
        c_blk = c_blk_ref[...]                       # (row_blk, 2*d_pad)
        c_all = c_all_ref[...]                       # (b_pad, 2*d_pad)

        dn = (((1,), (1,)), ((), ()))                # contract last dims, no .T
        # logits block: T_blk @ A.T / temperature    -> (row_blk, b_pad)
        logits = lax.dot_general(
            t_blk, a_all, dn, preferred_element_type=jnp.float32) * inv_temp
        # fused self-similarity: C_blk @ C.T == A_blk@A.T + T_blk@T.T
        sim = lax.dot_general(
            c_blk, c_all, dn, preferred_element_type=jnp.float32)

        # validity masks for zero-padded rows / columns (b_true is static)
        row_ids = lax.broadcasted_iota(jnp.int32, (row_blk, 1), 0) + blk * row_blk
        row_ok = row_ids < b_true                    # (row_blk, 1)
        col_ok = lax.broadcasted_iota(jnp.int32, (1, b_pad), 1) < b_true
        ok = jnp.logical_and(row_ok, col_ok)         # (row_blk, b_pad)

        logits_m = jnp.where(ok, logits, _NEG)
        sim_m = jnp.where(ok, sim * half_temp, _NEG)

        # ---- soft targets: row softmax of (A@A.T + T@T.T)/2 * temp ----
        t_max = jnp.max(sim_m, axis=-1, keepdims=True)
        t_exp = jnp.exp(sim_m - t_max)
        t_den = jnp.sum(t_exp, axis=-1, keepdims=True)
        # NOTE: pl.reciprocal(t_den, approx=True) would move this divide to the
        # EUP slot; kept exact so the loss tracks the reference within ~1e-5.
        targets = jnp.where(row_ok, t_exp / t_den, 0.0)

        # ---- text direction: row logsumexp + Frobenius term ----
        r_max = jnp.max(logits_m, axis=-1, keepdims=True)
        r_lse = r_max + jnp.log(
            jnp.sum(jnp.exp(logits_m - r_max), axis=-1, keepdims=True))
        s1_ref[...] = s1_ref[...] + _sum_all(targets * logits)
        s2_ref[...] = s2_ref[...] + jnp.sum(
            jnp.where(row_ok, r_lse, 0.0), axis=0, keepdims=True)

        # ---- audio direction, transpose-free: online column LSE + col sums ----
        new_cmax = jnp.maximum(cmax_ref[...],
                               jnp.max(logits_m, axis=0, keepdims=True))
        csum_ref[...] = (csum_ref[...] * jnp.exp(cmax_ref[...] - new_cmax)
                         + jnp.sum(jnp.exp(logits_m - new_cmax), axis=0,
                                   keepdims=True))
        cmax_ref[...] = new_cmax
        ctsum_ref[...] = ctsum_ref[...] + jnp.sum(targets, axis=0, keepdims=True)

        # ---- finalize on the last row block ----
        @pl.when(blk == n_blocks - 1)
        def _finalize():
            col_lse = cmax_ref[...] + jnp.log(csum_ref[...])        # (1, b_pad)
            s3 = jnp.sum(ctsum_ref[...] * col_lse, axis=-1, keepdims=True)
            total = s2_ref[...] + s3 - 2.0 * s1_ref[...]
            o_ref[...] = total * (1.0 / float(b_true))

    return kernel


def infonce_loss(text_embeddings, audio_embeddings, temperature: float = 1.0):
    """InfoNCE loss. Inputs: (batch, dim) each. Returns scalar float32."""
    assert text_embeddings.shape == audio_embeddings.shape
    assert text_embeddings.dtype == audio_embeddings.dtype
    b, d = text_embeddings.shape
    dtype = text_embeddings.dtype

    # sublane granularity: 8 rows for 4-byte dtypes, 16 for bf16/fp16
    sub = 8 if jnp.dtype(dtype).itemsize == 4 else 16

    # v7x has only 64 MiB VMEM/TC (vs 128 MiB on v5e/v6e) -> halve row block.
    try:
        kind = jax.devices()[0].device_kind.lower()
    except Exception:
        kind = ""
    row_blk_max = 128 if "v7" in kind else 256

    d_pad = _round_up(d, 128)               # lane-dense features
    if b <= row_blk_max:
        b_pad = _round_up(b, sub)
        row_blk = b_pad
    else:
        row_blk = row_blk_max
        b_pad = _round_up(b, row_blk)
    n_blocks = b_pad // row_blk

    def _pad(x):
        return jnp.pad(x, ((0, b_pad - b), (0, d_pad - d)))

    # C = [A | T]: a single lane-dense operand feeds both the logits matmul
    # and the fused self-similarity matmul, with no transposes anywhere.
    c = jnp.concatenate([_pad(audio_embeddings), _pad(text_embeddings)], axis=1)

    itemsize = jnp.dtype(dtype).itemsize
    est = (2 * row_blk * 2 * d_pad * itemsize      # double-buffered row blocks
           + 2 * b_pad * 2 * d_pad * itemsize      # resident full C operand
           + 10 * row_blk * b_pad * 4              # f32 block temporaries
           + 8 * b_pad * 4 + 4096)                 # column accumulators etc.
    vmem_limit = int(min(max(2 * est, 32 << 20), 48 << 20))  # v7x headroom

    kernel = _make_infonce_kernel(
        temperature=temperature, b_true=b, b_pad=b_pad, d_pad=d_pad,
        row_blk=row_blk, n_blocks=n_blocks)

    out = pl.pallas_call(
        kernel,
        out_shape=jax.ShapeDtypeStruct((1, 1), jnp.float32),
        grid_spec=pltpu.PrefetchScalarGridSpec(
            num_scalar_prefetch=0,
            grid=(n_blocks,),
            in_specs=[
                pl.BlockSpec((row_blk, 2 * d_pad), lambda i: (i, 0)),
                pl.BlockSpec((b_pad, 2 * d_pad), lambda i: (0, 0)),
            ],
            out_specs=pl.BlockSpec((1, 1), lambda i: (0, 0)),
            scratch_shapes=[
                pltpu.VMEM((1, 1), jnp.float32),      # s1 = sum(targets*logits)
                pltpu.VMEM((1, 1), jnp.float32),      # s2 = sum(row logsumexp)
                pltpu.VMEM((1, b_pad), jnp.float32),  # running column max
                pltpu.VMEM((1, b_pad), jnp.float32),  # running column sum-exp
                pltpu.VMEM((1, b_pad), jnp.float32),  # column sums of targets
            ],
        ),
        compiler_params=pltpu.CompilerParams(
            # The row-block axis carries the online column-LSE accumulators,
            # so it must stay sequential ("arbitrary").
            dimension_semantics=("arbitrary",),
            vmem_limit_bytes=vmem_limit,
        ),
    )(c, c)
    return out[0, 0]


def _reference_infonce(text, audio, temperature=1.0):
    # Pure-JAX reference replicating the PyTorch module exactly.
    logits = (text @ audio.T) / temperature
    audio_sim = audio @ audio.T
    texts_sim = text @ text.T
    targets = jax.nn.softmax((audio_sim + texts_sim) / 2.0 * temperature, axis=-1)

    def xent(preds, tgts):
        return jnp.sum(-tgts * jax.nn.log_softmax(preds, axis=-1), axis=1)

    loss = xent(logits, targets) + xent(logits.T, targets.T)
    return jnp.mean(loss)


if __name__ == "__main__":
    key = jax.random.PRNGKey(0)
    k1, k2, k3, k4 = jax.random.split(key, 4)

    # case 1: small shapes consistent with the module (B=8, D=32), temp=1.0
    t1 = jax.random.normal(k1, (8, 32), dtype=jnp.float32)
    a1 = jax.random.normal(k2, (8, 32), dtype=jnp.float32)
    out1 = jax.block_until_ready(infonce_loss(t1, a1, temperature=1.0))
    ref1 = jax.block_until_ready(_reference_infonce(t1, a1, temperature=1.0))
    assert jnp.allclose(out1, ref1, rtol=1e-4, atol=1e-4), (out1, ref1)

    # case 2: unaligned shapes exercise the padding / masking path
    t2 = jax.random.normal(k3, (6, 20), dtype=jnp.float32)
    a2 = jax.random.normal(k4, (6, 20), dtype=jnp.float32)
    out2 = jax.block_until_ready(infonce_loss(t2, a2, temperature=0.5))
    ref2 = jax.block_until_ready(_reference_infonce(t2, a2, temperature=0.5))
    assert jnp.allclose(out2, ref2, rtol=1e-4, atol=1e-4), (out2, ref2)

    print("KERNEL_OK")
</pallas_src>

<mosaic_0001>
module attributes {stable_mosaic.version = 11 : i64} {
  func.func @kernel(%arg0: i32, %arg1: memref<8x256xf32, #tpu.memory_space<vmem>>, %arg2: memref<8x256xf32, #tpu.memory_space<vmem>>, %arg3: memref<1x1xf32, #tpu.memory_space<vmem>>, %arg4: memref<1x1xf32, #tpu.memory_space<vmem>>, %arg5: memref<1x1xf32, #tpu.memory_space<vmem>>, %arg6: memref<1x8xf32, #tpu.memory_space<vmem>>, %arg7: memref<1x8xf32, #tpu.memory_space<vmem>>, %arg8: memref<1x8xf32, #tpu.memory_space<vmem>>) attributes {dimension_semantics = [#tpu.dimension_semantics<arbitrary>], iteration_bounds = array<i64: 1>, scalar_prefetch = 0 : i64, scratch_operands = 5 : i64, tpu.core_type = #tpu.core_type<tc>, window_params = [{transform_indices = @transform_0, window_bounds = array<i64: 8, 256>}, {pipeline_mode = #tpu.pipeline_mode<synchronous>, transform_indices = @transform_1, window_bounds = array<i64: 8, 256>}, {pipeline_mode = #tpu.pipeline_mode<synchronous>, transform_indices = @transform_2, window_bounds = array<i64: 1, 1>}]} {
    %c0_i32 = arith.constant 0 : i32
    %0 = arith.cmpi eq, %arg0, %c0_i32 : i32
    %1 = arith.extui %0 : i1 to i32
    %c0_i32_0 = arith.constant 0 : i32
    %2 = arith.cmpi ne, %1, %c0_i32_0 : i32
    scf.if %2 {
      %cst_50 = arith.constant 0.000000e+00 : f32
      %91 = vector.broadcast %cst_50 : f32 to vector<1x1xf32>
      %c0_51 = arith.constant 0 : index
      %c0_52 = arith.constant 0 : index
      %92 = vector.load %arg4[%c0_51, %c0_52] : memref<1x1xf32, #tpu.memory_space<vmem>>, vector<1x1xf32>
      tpu.vector_store %arg4[%c0_51, %c0_52], %91 {strides = array<i32>} : memref<1x1xf32, #tpu.memory_space<vmem>>, vector<1x1xf32>,
      %cst_53 = arith.constant 0.000000e+00 : f32
      %93 = vector.broadcast %cst_53 : f32 to vector<1x1xf32>
      %c0_54 = arith.constant 0 : index
      %c0_55 = arith.constant 0 : index
      %94 = vector.load %arg5[%c0_54, %c0_55] : memref<1x1xf32, #tpu.memory_space<vmem>>, vector<1x1xf32>
      tpu.vector_store %arg5[%c0_54, %c0_55], %93 {strides = array<i32>} : memref<1x1xf32, #tpu.memory_space<vmem>>, vector<1x1xf32>,
      %cst_56 = arith.constant -1.000000e+30 : f32
      %95 = vector.broadcast %cst_56 : f32 to vector<1x8xf32>
      %c0_57 = arith.constant 0 : index
      %c0_58 = arith.constant 0 : index
      %96 = vector.load %arg6[%c0_57, %c0_58] : memref<1x8xf32, #tpu.memory_space<vmem>>, vector<1x8xf32>
      tpu.vector_store %arg6[%c0_57, %c0_58], %95 {strides = array<i32>} : memref<1x8xf32, #tpu.memory_space<vmem>>, vector<1x8xf32>,
      %cst_59 = arith.constant 0.000000e+00 : f32
      %97 = vector.broadcast %cst_59 : f32 to vector<1x8xf32>
      %c0_60 = arith.constant 0 : index
      %c0_61 = arith.constant 0 : index
      %98 = vector.load %arg7[%c0_60, %c0_61] : memref<1x8xf32, #tpu.memory_space<vmem>>, vector<1x8xf32>
      tpu.vector_store %arg7[%c0_60, %c0_61], %97 {strides = array<i32>} : memref<1x8xf32, #tpu.memory_space<vmem>>, vector<1x8xf32>,
      %cst_62 = arith.constant 0.000000e+00 : f32
      %99 = vector.broadcast %cst_62 : f32 to vector<1x8xf32>
      %c0_63 = arith.constant 0 : index
      %c0_64 = arith.constant 0 : index
      %100 = vector.load %arg8[%c0_63, %c0_64] : memref<1x8xf32, #tpu.memory_space<vmem>>, vector<1x8xf32>
      tpu.vector_store %arg8[%c0_63, %c0_64], %99 {strides = array<i32>} : memref<1x8xf32, #tpu.memory_space<vmem>>, vector<1x8xf32>,
    } else {
    }
    %c0 = arith.constant 0 : index
    %c0_1 = arith.constant 0 : index
    %3 = vector.load %arg2[%c0, %c0_1] : memref<8x256xf32, #tpu.memory_space<vmem>>, vector<8x128xf32>
    %c0_2 = arith.constant 0 : index
    %c128 = arith.constant 128 : index
    %4 = vector.load %arg1[%c0_2, %c128] : memref<8x256xf32, #tpu.memory_space<vmem>>, vector<8x128xf32>
    %c0_3 = arith.constant 0 : index
    %c0_4 = arith.constant 0 : index
    %5 = vector.load %arg1[%c0_3, %c0_4] : memref<8x256xf32, #tpu.memory_space<vmem>>, vector<8x256xf32>
    %c0_5 = arith.constant 0 : index
    %c0_6 = arith.constant 0 : index
    %6 = vector.load %arg2[%c0_5, %c0_6] : memref<8x256xf32, #tpu.memory_space<vmem>>, vector<8x256xf32>
    %cst = arith.constant dense<0.000000e+00> : vector<8x8xf32>
    %7 = tpu.matmul %4, %3, %cst {dimension_numbers = #tpu.dot_dimension_numbers<[1], [1], [0], [0], [0, 0, 1, 0], [], []>} : vector<8x128xf32>, vector<8x128xf32>, vector<8x8xf32> -> vector<8x8xf32>
    %cst_7 = arith.constant 1.000000e+00 : f32
    %8 = vector.broadcast %cst_7 : f32 to vector<8x8xf32>
    %9 = arith.mulf %7, %8 : vector<8x8xf32>
    %cst_8 = arith.constant dense<0.000000e+00> : vector<8x8xf32>
    %10 = tpu.matmul %5, %6, %cst_8 {dimension_numbers = #tpu.dot_dimension_numbers<[1], [1], [0], [0], [0, 0, 1, 0], [], []>} : vector<8x256xf32>, vector<8x256xf32>, vector<8x8xf32> -> vector<8x8xf32>
    %11 = tpu.iota {dimensions = array<i32: 0>} : vector<8x1xi32>
    %c8_i32 = arith.constant 8 : i32
    %12 = arith.muli %arg0, %c8_i32 : i32
    %13 = vector.broadcast %12 : i32 to vector<8x1xi32>
    %14 = arith.addi %11, %13 : vector<8x1xi32>
    %c8_i32_9 = arith.constant 8 : i32
    %15 = vector.broadcast %c8_i32_9 : i32 to vector<8x1xi32>
    %16 = arith.cmpi slt, %14, %15 : vector<8x1xi32>
    %17 = tpu.iota {dimensions = array<i32: 1>} : vector<1x8xi32>
    %c8_i32_10 = arith.constant 8 : i32
    %18 = vector.broadcast %c8_i32_10 : i32 to vector<1x8xi32>
    %19 = arith.cmpi slt, %17, %18 : vector<1x8xi32>
    %20 = vector.broadcast %16 : vector<8x1xi1> to vector<8x8xi1>
    %21 = vector.broadcast %19 : vector<1x8xi1> to vector<8x8xi1>
    %22 = arith.andi %20, %21 : vector<8x8xi1>
    %cst_11 = arith.constant -1.000000e+30 : f32
    %23 = vector.broadcast %cst_11 : f32 to vector<8x8xf32>
    %24 = arith.select %22, %9, %23 : vector<8x8xi1>, vector<8x8xf32>
    %cst_12 = arith.constant 5.000000e-01 : f32
    %25 = vector.broadcast %cst_12 : f32 to vector<8x8xf32>
    %26 = arith.mulf %10, %25 : vector<8x8xf32>
    %cst_13 = arith.constant -1.000000e+30 : f32
    %27 = vector.broadcast %cst_13 : f32 to vector<8x8xf32>
    %28 = arith.select %22, %26, %27 : vector<8x8xi1>, vector<8x8xf32>
    %cst_14 = arith.constant dense<0xFF800000> : vector<8xf32>
    %29 = vector.multi_reduction <maximumf>, %28, %cst_14 [1] : vector<8x8xf32> to vector<8xf32>
    %30 = vector.shape_cast %29 : vector<8xf32> to vector<8x1xf32>
    %31 = vector.broadcast %30 : vector<8x1xf32> to vector<8x8xf32>
    %32 = arith.subf %28, %31 : vector<8x8xf32>
    %33 = math.exp %32 : vector<8x8xf32>
    %cst_15 = arith.constant dense<0.000000e+00> : vector<8xf32>
    %34 = vector.multi_reduction <add>, %33, %cst_15 [1] : vector<8x8xf32> to vector<8xf32>
    %35 = vector.shape_cast %34 : vector<8xf32> to vector<8x1xf32>
    %36 = vector.broadcast %35 : vector<8x1xf32> to vector<8x8xf32>
    %37 = arith.divf %33, %36 : vector<8x8xf32>
    %cst_16 = arith.constant 0.000000e+00 : f32
    %38 = vector.shape_cast %16 : vector<8x1xi1> to vector<8x1xi1>
    %39 = vector.broadcast %38 : vector<8x1xi1> to vector<8x8xi1>
    %40 = vector.broadcast %cst_16 : f32 to vector<8x8xf32>
    %41 = arith.select %39, %37, %40 : vector<8x8xi1>, vector<8x8xf32>
    %cst_17 = arith.constant dense<0xFF800000> : vector<8xf32>
    %42 = vector.multi_reduction <maximumf>, %24, %cst_17 [1] : vector<8x8xf32> to vector<8xf32>
    %43 = vector.shape_cast %42 : vector<8xf32> to vector<8x1xf32>
    %44 = vector.broadcast %43 : vector<8x1xf32> to vector<8x8xf32>
    %45 = arith.subf %24, %44 : vector<8x8xf32>
    %46 = math.exp %45 : vector<8x8xf32>
    %cst_18 = arith.constant dense<0.000000e+00> : vector<8xf32>
    %47 = vector.multi_reduction <add>, %46, %cst_18 [1] : vector<8x8xf32> to vector<8xf32>
    %48 = vector.shape_cast %47 : vector<8xf32> to vector<8x1xf32>
    %49 = math.log %48 : vector<8x1xf32>
    %50 = arith.addf %43, %49 : vector<8x1xf32>
    %c0_19 = arith.constant 0 : index
    %c0_20 = arith.constant 0 : index
    %51 = vector.load %arg4[%c0_19, %c0_20] : memref<1x1xf32, #tpu.memory_space<vmem>>, vector<1x1xf32>
    %52 = arith.mulf %41, %9 : vector<8x8xf32>
    %cst_21 = arith.constant dense<0.000000e+00> : vector<8xf32>
    %53 = vector.multi_reduction <add>, %52, %cst_21 [1] : vector<8x8xf32> to vector<8xf32>
    %54 = vector.shape_cast %53 : vector<8xf32> to vector<8x1xf32>
    %cst_22 = arith.constant dense<0.000000e+00> : vector<1xf32>
    %55 = vector.multi_reduction <add>, %54, %cst_22 [0] : vector<8x1xf32> to vector<1xf32>
    %56 = vector.shape_cast %55 : vector<1xf32> to vector<1x1xf32>
    %57 = arith.addf %51, %56 : vector<1x1xf32>
    %c0_23 = arith.constant 0 : index
    %c0_24 = arith.constant 0 : index
    %58 = vector.load %arg4[%c0_23, %c0_24] : memref<1x1xf32, #tpu.memory_space<vmem>>, vector<1x1xf32>
    tpu.vector_store %arg4[%c0_23, %c0_24], %57 {strides = array<i32>} : memref<1x1xf32, #tpu.memory_space<vmem>>, vector<1x1xf32>,
    %c0_25 = arith.constant 0 : index
    %c0_26 = arith.constant 0 : index
    %59 = vector.load %arg5[%c0_25, %c0_26] : memref<1x1xf32, #tpu.memory_space<vmem>>, vector<1x1xf32>
    %cst_27 = arith.constant 0.000000e+00 : f32
    %60 = vector.broadcast %cst_27 : f32 to vector<8x1xf32>
    %61 = arith.select %16, %50, %60 : vector<8x1xi1>, vector<8x1xf32>
    %cst_28 = arith.constant dense<0.000000e+00> : vector<1xf32>
    %62 = vector.multi_reduction <add>, %61, %cst_28 [0] : vector<8x1xf32> to vector<1xf32>
    %63 = vector.shape_cast %62 : vector<1xf32> to vector<1x1xf32>
    %64 = arith.addf %59, %63 : vector<1x1xf32>
    %c0_29 = arith.constant 0 : index
    %c0_30 = arith.constant 0 : index
    %65 = vector.load %arg5[%c0_29, %c0_30] : memref<1x1xf32, #tpu.memory_space<vmem>>, vector<1x1xf32>
    tpu.vector_store %arg5[%c0_29, %c0_30], %64 {strides = array<i32>} : memref<1x1xf32, #tpu.memory_space<vmem>>, vector<1x1xf32>,
    %c0_31 = arith.constant 0 : index
    %c0_32 = arith.constant 0 : index
    %66 = vector.load %arg6[%c0_31, %c0_32] : memref<1x8xf32, #tpu.memory_space<vmem>>, vector<1x8xf32>
    %cst_33 = arith.constant dense<0xFF800000> : vector<8xf32>
    %67 = vector.multi_reduction <maximumf>, %24, %cst_33 [0] : vector<8x8xf32> to vector<8xf32>
    %68 = vector.shape_cast %67 : vector<8xf32> to vector<1x8xf32>
    %69 = arith.maximumf %66, %68 : vector<1x8xf32>
    %c0_34 = arith.constant 0 : index
    %c0_35 = arith.constant 0 : index
    %70 = vector.load %arg7[%c0_34, %c0_35] : memref<1x8xf32, #tpu.memory_space<vmem>>, vector<1x8xf32>
    %c0_36 = arith.constant 0 : index
    %c0_37 = arith.constant 0 : index
    %71 = vector.load %arg6[%c0_36, %c0_37] : memref<1x8xf32, #tpu.memory_space<vmem>>, vector<1x8xf32>
    %72 = arith.subf %71, %69 : vector<1x8xf32>
    %73 = math.exp %72 : vector<1x8xf32>
    %74 = arith.mulf %70, %73 : vector<1x8xf32>
    %75 = vector.broadcast %69 : vector<1x8xf32> to vector<8x8xf32>
    %76 = arith.subf %24, %75 : vector<8x8xf32>
    %77 = math.exp %76 : vector<8x8xf32>
    %cst_38 = arith.constant dense<0.000000e+00> : vector<8xf32>
    %78 = vector.multi_reduction <add>, %77, %cst_38 [0] : vector<8x8xf32> to vector<8xf32>
    %79 = vector.shape_cast %78 : vector<8xf32> to vector<1x8xf32>
    %80 = arith.addf %74, %79 : vector<1x8xf32>
    %c0_39 = arith.constant 0 : index
    %c0_40 = arith.constant 0 : index
    %81 = vector.load %arg7[%c0_39, %c0_40] : memref<1x8xf32, #tpu.memory_space<vmem>>, vector<1x8xf32>
    tpu.vector_store %arg7[%c0_39, %c0_40], %80 {strides = array<i32>} : memref<1x8xf32, #tpu.memory_space<vmem>>, vector<1x8xf32>,
    %c0_41 = arith.constant 0 : index
    %c0_42 = arith.constant 0 : index
    %82 = vector.load %arg6[%c0_41, %c0_42] : memref<1x8xf32, #tpu.memory_space<vmem>>, vector<1x8xf32>
    tpu.vector_store %arg6[%c0_41, %c0_42], %69 {strides = array<i32>} : memref<1x8xf32, #tpu.memory_space<vmem>>, vector<1x8xf32>,
    %c0_43 = arith.constant 0 : index
    %c0_44 = arith.constant 0 : index
    %83 = vector.load %arg8[%c0_43, %c0_44] : memref<1x8xf32, #tpu.memory_space<vmem>>, vector<1x8xf32>
    %cst_45 = arith.constant dense<0.000000e+00> : vector<8xf32>
    %84 = vector.multi_reduction <add>, %41, %cst_45 [0] : vector<8x8xf32> to vector<8xf32>
    %85 = vector.shape_cast %84 : vector<8xf32> to vector<1x8xf32>
    %86 = arith.addf %83, %85 : vector<1x8xf32>
    %c0_46 = arith.constant 0 : index
    %c0_47 = arith.constant 0 : index
    %87 = vector.load %arg8[%c0_46, %c0_47] : memref<1x8xf32, #tpu.memory_space<vmem>>, vector<1x8xf32>
    tpu.vector_store %arg8[%c0_46, %c0_47], %86 {strides = array<i32>} : memref<1x8xf32, #tpu.memory_space<vmem>>, vector<1x8xf32>,
    %c0_i32_48 = arith.constant 0 : i32
    %88 = arith.cmpi eq, %arg0, %c0_i32_48 : i32
    %89 = arith.extui %88 : i1 to i32
    %c0_i32_49 = arith.constant 0 : i32
    %90 = arith.cmpi ne, %89, %c0_i32_49 : i32
    scf.if %90 {
      %c0_50 = arith.constant 0 : index
      %c0_51 = arith.constant 0 : index
      %91 = vector.load %arg6[%c0_50, %c0_51] : memref<1x8xf32, #tpu.memory_space<vmem>>, vector<1x8xf32>
      %c0_52 = arith.constant 0 : index
      %c0_53 = arith.constant 0 : index
      %92 = vector.load %arg7[%c0_52, %c0_53] : memref<1x8xf32, #tpu.memory_space<vmem>>, vector<1x8xf32>
      %93 = math.log %92 : vector<1x8xf32>
      %94 = arith.addf %91, %93 : vector<1x8xf32>
      %c0_54 = arith.constant 0 : index
      %c0_55 = arith.constant 0 : index
      %95 = vector.load %arg8[%c0_54, %c0_55] : memref<1x8xf32, #tpu.memory_space<vmem>>, vector<1x8xf32>
      %96 = arith.mulf %95, %94 : vector<1x8xf32>
      %cst_56 = arith.constant dense<0.000000e+00> : vector<1xf32>
      %97 = vector.multi_reduction <add>, %96, %cst_56 [1] : vector<1x8xf32> to vector<1xf32>
      %98 = vector.shape_cast %97 : vector<1xf32> to vector<1x1xf32>
      %c0_57 = arith.constant 0 : index
      %c0_58 = arith.constant 0 : index
      %99 = vector.load %arg5[%c0_57, %c0_58] : memref<1x1xf32, #tpu.memory_space<vmem>>, vector<1x1xf32>
      %100 = arith.addf %99, %98 : vector<1x1xf32>
      %c0_59 = arith.constant 0 : index
      %c0_60 = arith.constant 0 : index
      %101 = vector.load %arg4[%c0_59, %c0_60] : memref<1x1xf32, #tpu.memory_space<vmem>>, vector<1x1xf32>
      %cst_61 = arith.constant 2.000000e+00 : f32
      %102 = vector.broadcast %cst_61 : f32 to vector<1x1xf32>
      %103 = arith.mulf %102, %101 : vector<1x1xf32>
      %104 = arith.subf %100, %103 : vector<1x1xf32>
      %cst_62 = arith.constant 1.250000e-01 : f32
      %105 = vector.broadcast %cst_62 : f32 to vector<1x1xf32>
      %106 = arith.mulf %104, %105 : vector<1x1xf32>
      %c0_63 = arith.constant 0 : index
      %c0_64 = arith.constant 0 : index
      %107 = vector.load %arg3[%c0_63, %c0_64] : memref<1x1xf32, #tpu.memory_space<vmem>>, vector<1x1xf32>
      tpu.vector_store %arg3[%c0_63, %c0_64], %106 {strides = array<i32>} : memref<1x1xf32, #tpu.memory_space<vmem>>, vector<1x1xf32>,
    } else {
    }
    return
  }
  func.func @transform_0(%arg0: i32) -> (i32, i32) {
    %c0_i32 = arith.constant 0 : i32
    %c0_i32_0 = arith.constant 0 : i32
    return %arg0, %c0_i32 : i32, i32
  }
  func.func @transform_1(%arg0: i32) -> (i32, i32) {
    %c0_i32 = arith.constant 0 : i32
    %c0_i32_0 = arith.constant 0 : i32
    %c0_i32_1 = arith.constant 0 : i32
    return %c0_i32, %c0_i32_0 : i32, i32
  }
  func.func @transform_2(%arg0: i32) -> (i32, i32) {
    %c0_i32 = arith.constant 0 : i32
    %c0_i32_0 = arith.constant 0 : i32
    %c0_i32_1 = arith.constant 0 : i32
    return %c0_i32, %c0_i32_0 : i32, i32
  }
}

</mosaic_0001>

<bundles_post_ra>
// kernel: tpu_custom_call.1
= control target key start
LH: loop header
LB: loop body
LE: loop exit
PB: predicated region body
PF: predicated region fallthrough
CT: control target
= control target key end

     0   :  { %7 = vsyncpa [#allocation8], 0  ;;  %s426_s0 = inlined_call_operand.hbm [shape: f32[8,256], index: 0, kind: input, shape index: {}]   ;;  %s427_s1 = inlined_call_operand.hbm [shape: f32[8,256], index: 1, kind: input, shape index: {}]   ;;  %s428_s2 = inlined_call_operand.hbm [shape: f32[1,1], index: 2, kind: output, shape index: {}]  }
   0x1   :  { %8 = vsyncpa [#allocation11], 0 }
   0x2   :  { %9 = vsyncpa [#allocation9], 0  ;;  %s15_s11 = sshll.u32 %s426_s0, 4  ;;  %s370_s12 = smov [#allocation7]   ;;  %s16_s11 = int_to_ptr.hbm [resolvable:$true] %s15_s11 }
   0x3   :  { %s17_s13 = sshll.u32 %s370_s12, 4  ;;  %s26_s16 = sshll.u32 %s427_s1, 4  ;;  %s18_s13 = int_to_ptr.vmem [resolvable:$true] %s17_s13  ;;  %s27_s16 = int_to_ptr.hbm [resolvable:$true] %s26_s16 }
   0x4   :  { %20 = dma.hbm_to_vmem [thread:$0]  %s16_s11, 256, %s18_s13, [#allocation8]  }
   0x5   :  { %s371_s17 = smov [#allocation10]  }
   0x6   :  { %s28_s18 = sshll.u32 %s371_s17, 4  ;;  %s29_s18 = int_to_ptr.vmem [resolvable:$true] %s28_s18 }
   0x7   :  { %31 = dma.hbm_to_vmem [thread:$0]  %s27_s16, 256, %s29_s18, [#allocation11]  }
   0x8   :  { %364 = dma.done.wait [#allocation8], 256  }
   0x9   :  { %365 = vsyncadd [#allocation8], 4294967040 }
   0xa   :  { %366 = dma.done.wait [#allocation11], 256  }
   0xb   :  { %367 = vsyncadd [#allocation11], 4294967040  ;;  %v51_v0 = vld [vmem:[#allocation10] sm:$0xff]  ;;  %v55_v1 = vld [vmem:[#allocation10 + $0x8] sm:$0xff]  ;;  %vm47_vm0 = vcmask 57344   ;;  %v373_v5 = vmov 0.0   ;;  %v122_v6 = vlaneseq }
   0xc   :  { %71 = vmatpush.xpose.msra.mxu0 %v51_v0  ;;  %111 = vmatpush.xpose.msra.mxu2 %v55_v1  ;;  %v52_v2 = vld [vmem:[#allocation7 + $0x8] sm:$0xff]  ;;  %v53_v3 = vld [vmem:[#allocation7] sm:$0xff]  ;;  %v372_v4 = vmov -1e+30   ;;  %49 = vst.msk [vmem:[#allocation5] sm:$0x1] %vm47_vm0, %v373_v5 }
   0xd   :  { %91 = vmatpush.xpose.msra.mxu1 %v51_v0  ;;  %48 = vst.msk [vmem:[#allocation4] sm:$0x1] %vm47_vm0, %v372_v4  ;;  %v123_v7 = vand.u32 127, %v122_v6  ;;  %vm133_vm2 = vcmask 64512   ;;  %vm44_vm3 = vcmask 0   ;;  %s374_s0 = smov [#allocation12]  }
   0xe   :  { %50 = vst.msk [vmem:[#allocation6] sm:$0x1] %vm47_vm0, %v373_v5  ;;  %s260_s1 = sshll.u32 %s374_s0, 4  ;;  %s262_s21 = sshll.u32 %s428_s2, 4  ;;  %s261_s1 = int_to_ptr.vmem [resolvable:$true] %s260_s1  ;;  %s263_s21 = int_to_ptr.hbm [resolvable:$true] %s262_s21 }
   0xf   :  { %72 = vmatmul.f32.vlgmr.msra.gmra.mxu0 %v52_v2  ;;  %112 = vmatmul.f32.vlgmr.msra.gmra.mxu2 %v52_v2  ;;  %vm124_vm1 = vcmp.lt.s32.totalorder %v123_v7, 8  ;;  %45 = vst.msk [vmem:[#allocation2] sm:$0x1] %vm44_vm3, %v373_v5 }
  0x10   :  { %92 = vmatmul.f32.vlgmr.msra.gmra.mxu1 %v53_v3  ;;  %46 = vst.msk [vmem:[#allocation3] sm:$0x1] %vm44_vm3, %v373_v5 }
  0x13   :  { %v203_v36 = vld [vmem:[#allocation5] sm:$0x1] }
  0x14   :  { %v195_v21 = vld [vmem:[#allocation4] sm:$0x1] }
  0x17   :  { %v185_v2 = vld [vmem:[#allocation3] sm:$0x1] }
  0x8c   :  { %v401_v8 = vpop.f32.mrf.mxu0 }
  0x8d   :  { %v130_v9 = vsel %vm124_vm1, %v401_v8, -1e+30  ;;  %v93_v12 = vpop.f32.mrf.mxu1 }
  0x8e   :  { %v159_v10 = vsel %vm133_vm2, %v130_v9, -inf }
  0x8f   :  { %160 = vmax.xlane.f32.xlu1 %v159_v10  ;;  %v196_v11 = vrot.slane %v159_v10, 4 }
  0x91   :  { %v197_v13 = vmax.f32 %v159_v10, %v196_v11 }
  0x92   :  { %v113_v14 = vpop.f32.mrf.mxu2 }
  0x93   :  { %v198_v15 = vrot.slane %v197_v13, 2  ;;  %v114_v16 = vadd.f32 %v113_v14, %v93_v12 }
  0x95   :  { %v199_v17 = vmax.f32 %v197_v13, %v198_v15  ;;  %v131_v18 = vmul.f32 0.5, %v114_v16 }
  0x97   :  { %v200_v19 = vrot.slane %v199_v17, 1  ;;  %v132_v20 = vsel %vm124_vm1, %v131_v18, -1e+30 }
  0x98   :  { %v134_v22 = vsel %vm133_vm2, %v132_v20, -inf }
  0x99   :  { %v201_v23 = vmax.f32 %v199_v17, %v200_v19  ;;  %135 = vmax.xlane.f32.xlu0 %v134_v22  ;;  %v225_v22 = vld [vmem:[#allocation6] sm:$0x1] }
  0x9b   :  { %v202_v24 = vmax.f32 %v195_v21, %v201_v23 }
  0x9d   :  { %v209_v25 = vperm.slane %v202_v24, 0  ;;  %224 = vst.msk [vmem:[#allocation4] sm:$0x1] %vm47_vm0, %v202_v24  ;;  %v204_v28 = vsub.f32 %v195_v21, %v202_v24 }
  0x9f   :  { %v211_v26 = vsub.f32 %v130_v9, %v209_v25  ;;  %v205_v29 = vmul.f32 1.442695, %v204_v28 }
  0xa1   :  { %v212_v27 = vmul.f32 1.442695, %v211_v26 }
  0xa3   :  { %278 = vpow2.f32 %v212_v27 }
  0xa4   :  { %280 = vpow2.f32 %v205_v29 }
  0xa9   :  { %v279_v30 = vpop.eup %278 }
  0xaa   :  { %v214_v31 = vsel %vm133_vm2, %v279_v30, 0.0  ;;  %v281_v35 = vpop.eup %280 }
  0xab   :  { %v215_v32 = vrot.slane %v214_v31, 4  ;;  %v207_v38 = vmul.f32 %v281_v35, %v203_v36 }
  0xad   :  { %v216_v33 = vadd.f32 %v215_v32, %v214_v31 }
  0xaf   :  { %v217_v34 = vrot.slane %v216_v33, 2 }
  0xb1   :  { %v218_v37 = vadd.f32 %v217_v34, %v216_v33 }
  0xb3   :  { %v219_v39 = vrot.slane %v218_v37, 1 }
  0xb5   :  { %v220_v40 = vadd.f32 %v219_v39, %v218_v37  ;;  %v171_v37 = vld [vmem:[#allocation2] sm:$0x1] }
  0xb7   :  { %v221_v41 = vadd.f32 %v220_v40, %v207_v38 }
  0xb9   :  { %223 = vst.msk [vmem:[#allocation5] sm:$0x1] %vm47_vm0, %v221_v41 }
  0xc0   :  { %v239_v19 = vld [vmem:[#allocation5] sm:$0x1] }
 0x102   :  { %v161_v42 = vpop.xlane.xlu1 %160 }
 0x103   :  { %v162_v43 = vsub.f32 %v130_v9, %v161_v42 }
 0x105   :  { %v163_v44 = vmul.f32 1.442695, %v162_v43 }
 0x107   :  { %282 = vpow2.f32 %v163_v44 }
 0x10c   :  { %v136_v45 = vpop.xlane.xlu0 %135 }
 0x10d   :  { %v283_v46 = vpop.eup %282  ;;  %v137_v47 = vsub.f32 %v132_v20, %v136_v45 }
 0x10e   :  { %v165_v48 = vsel %vm133_vm2, %v283_v46, 0.0 }
 0x10f   :  { %v138_v49 = vmul.f32 1.442695, %v137_v47  ;;  %166 = vadd.xlane.f32.xlu1 %v165_v48 }
 0x111   :  { %284 = vpow2.f32 %v138_v49 }
 0x117   :  { %v285_v50 = vpop.eup %284 }
 0x118   :  { %v140_v51 = vsel %vm133_vm2, %v285_v50, 0.0 }
 0x119   :  { %141 = vadd.xlane.f32.xlu0 %v140_v51 }
 0x182   :  { %v167_v52 = vpop.xlane.xlu1 %166 }
 0x183   :  { %286 = vlog2.f32 %v167_v52 }
 0x189   :  { %v287_v53 = vpop.eup %286 }
 0x18a   :  { %v169_v54 = vmul.f32 0.6931472, %v287_v53 }
 0x18c   :  { %v170_v55 = vadd.f32 %v169_v54, %v161_v42  ;;  %v142_v56 = vpop.xlane.xlu0 %141 }
 0x18d   :  { %288 = vrcp.f32 %v142_v56  ;;  %v154_v1 = vand.u32 2147483648, %v142_v56  ;;  %v152_v5 = vand.u32 2147483647, %v142_v56  ;;  %vm148_vm5 = vweird.f32 %v142_v56 }
 0x18e   :  { %v187_v57 = vrot.slane %v170_v55, 4  ;;  %290 = vlog2.f32 %v239_v19 }
 0x18f   :  { %v155_v9 = vor.u32 1.1754944e-38, %v154_v1  ;;  %vm153_vm7 = vcmp.eq.f32.partialorder %v152_v5, 8.507059e+37 }
 0x190   :  { %v188_v58 = vadd.f32 %v187_v57, %v170_v55 }
 0x192   :  { %v189_v59 = vrot.slane %v188_v58, 2 }
 0x193   :  { %v289_v60 = vpop.eup %288 }
 0x194   :  { %v190_v61 = vadd.f32 %v189_v59, %v188_v58  ;;  %v144_v62 = vmul.f32 %v289_v60, %v142_v56  ;;  %vm149_vm4 = vweird.f32 %v289_v60  ;;  %v291_v25 = vpop.eup %290 }
 0x195   :  { %vm150_vm6 = vmor %vm148_vm5, %vm149_vm4  ;;  %v241_v26 = vmul.f32 0.6931472, %v291_v25 }
 0x196   :  { %v191_v63 = vrot.slane %v190_v61, 1  ;;  %v145_v0 = vsub.f32 1.0, %v144_v62 }
 0x198   :  { %v192_v3 = vadd.f32 %v191_v63, %v190_v61  ;;  %v146_v4 = vmul.f32 %v289_v60, %v145_v0 }
 0x19a   :  { %v147_v6 = vadd.f32 %v289_v60, %v146_v4  ;;  %v193_v7 = vadd.f32 %v192_v3, %v185_v2 }
 0x19c   :  { %v151_v10 = vsel %vm150_vm6, %v289_v60, %v147_v6  ;;  %194 = vst.msk [vmem:[#allocation3] sm:$0x1] %vm44_vm3, %v193_v7 }
 0x19d   :  { %v156_v11 = vsel %vm153_vm7, %v155_v9, %v151_v10 }
 0x19e   :  { %v157_v12 = vmul.f32 %v285_v50, %v156_v11 }
 0x1a0   :  { %v172_v13 = vmul.f32 %v157_v12, %v401_v8  ;;  %v226_v14 = vsel %vm133_vm2, %v157_v12, 0.0  ;;  %v238_v8 = vld [vmem:[#allocation4] sm:$0x1] }
 0x1a1   :  { %v227_v15 = vrot.slane %v226_v14, 4  ;;  %v242_v27 = vadd.f32 %v241_v26, %v238_v8 }
 0x1a2   :  { %v173_v16 = vsel %vm133_vm2, %v172_v13, 0.0 }
 0x1a3   :  { %v228_v17 = vadd.f32 %v227_v15, %v226_v14  ;;  %174 = vadd.xlane.f32.xlu2 %v173_v16  ;;  %v248_v42 = vld [vmem:[#allocation3] sm:$0x1] }
 0x1a5   :  { %v229_v18 = vrot.slane %v228_v17, 2 }
 0x1a7   :  { %v230_v20 = vadd.f32 %v229_v18, %v228_v17 }
 0x1a9   :  { %v231_v21 = vrot.slane %v230_v20, 1 }
 0x1ab   :  { %v232_v23 = vadd.f32 %v231_v21, %v230_v20 }
 0x1ad   :  { %v233_v24 = vadd.f32 %v232_v23, %v225_v22 }
 0x1af   :  { %234 = vst.msk [vmem:[#allocation6] sm:$0x1] %vm47_vm0, %v233_v24 }
 0x1b6   :  { %v243_v28 = vld [vmem:[#allocation6] sm:$0x1] }
 0x1b7   :  { %v244_v29 = vmul.f32 %v243_v28, %v242_v27 }
 0x1b9   :  { %v245_v30 = vsel %vm47_vm0, %v244_v29, 0.0 }
 0x1ba   :  { %246 = vadd.xlane.f32.xlu2 %v245_v30 }
 0x216   :  { %v175_v31 = vpop.xlane.xlu2 %174 }
 0x217   :  { %v176_v32 = vrot.slane %v175_v31, 4 }
 0x219   :  { %v177_v33 = vadd.f32 %v176_v32, %v175_v31 }
 0x21b   :  { %v178_v34 = vrot.slane %v177_v33, 2 }
 0x21d   :  { %v179_v35 = vadd.f32 %v178_v34, %v177_v33 }
 0x21f   :  { %v180_v36 = vrot.slane %v179_v35, 1 }
 0x221   :  { %v181_v38 = vadd.f32 %v180_v36, %v179_v35 }
 0x223   :  { %v182_v39 = vadd.f32 %v181_v38, %v171_v37 }
 0x225   :  { %184 = vst.msk [vmem:[#allocation2] sm:$0x1] %vm44_vm3, %v182_v39 }
 0x22c   :  { %v250_v40 = vld [vmem:[#allocation2] sm:$0x1] }
 0x22d   :  { %v247_v41 = vpop.xlane.xlu2 %246  ;;  %v251_v43 = vmul.f32 2.0, %v250_v40 }
 0x22e   :  { %v249_v44 = vadd.f32 %v248_v42, %v247_v41 }
 0x230   :  { %v252_v45 = vsub.f32 %v249_v44, %v251_v43 }
 0x232   :  { %v253_v46 = vmul.f32 0.125, %v252_v45 }
 0x234   :  { %254 = vst.msk [vmem:[#allocation12] sm:$0x1] %vm44_vm3, %v253_v46 }
 0x235   :  { %265 = dma.vmem_to_hbm [thread:$0]  %s261_s1, 16, %s263_s21, [#allocation9]  }
 0x236   :  { %368 = dma.done.wait [#allocation9], 16  }
 0x237   :  { %369 = vsyncadd [#allocation9], 4294967280 }
 0x238   :  { %270 = vsyncpa [#allocation8], 1 }
 0x239   :  { %271 = vsyncpa [#allocation11], 1 }
 0x23a   :  { %272 = vsyncpa [#allocation9], 1 }

</bundles_post_ra>
